<compile_context>
chip_gen: v7x
topology: tpu7x:2x2x1
jax: 0.10.0
libtpu: 0.0.40
codegen_flags: <defaults>
</compile_context>

<pallas_src>
import jax
import jax.numpy as jnp
from jax import lax
from jax.experimental import pallas as pl
from jax.experimental.pallas import tpu as pltpu

N_EMBD = 64        # C in the PyTorch module
BLOCK_SIZE = 32    # max sequence length (size of the torch tril buffer)
# dropout = 0.0 in the reference -> identity, so it is omitted.


def head_kernel(x_ref, w_ref, o_ref):
    """x_ref: (B, T, C) bf16; w_ref: (C, 3H) bf16 = [Wk | Wq * C^-0.5 | Wv];
    o_ref: (B, T, H) in the caller's dtype."""
    x = x_ref[...]
    w = w_ref[...]
    B, T, C = x.shape
    H = w.shape[-1] // 3

    # Fused K/Q/V projection: one bf16 MXU matmul, f32 accumulation.
    kqv = jnp.einsum("btc,ch->bth", x, w, preferred_element_type=jnp.float32)
    k = kqv[..., 0 * H:1 * H].astype(jnp.bfloat16)
    q = kqv[..., 1 * H:2 * H].astype(jnp.bfloat16)   # score scale pre-baked into W_q
    v = kqv[..., 2 * H:3 * H].astype(jnp.bfloat16)

    # Per-batch scores (B, T, T): batched contraction of the head dim
    # (no flat (B*T, B*T) work, no explicit transpose).
    wei = jnp.einsum("bth,bsh->bts", q, k, preferred_element_type=jnp.float32)

    # Causal mask. Large finite negative instead of -inf: exp underflows to an
    # exact 0 and every row keeps its diagonal entry, so there are no
    # fully-masked-row / inf-arithmetic edge cases.
    row = lax.broadcasted_iota(jnp.int32, (B, T, T), 1)
    col = lax.broadcasted_iota(jnp.int32, (B, T, T), 2)
    wei = jnp.where(col <= row, wei, jnp.float32(-1e30))

    # Softmax in f32. Denominator: EUP approximate reciprocal + one Newton
    # step, which restores full f32 accuracy while keeping the divide off the VPU.
    m = jnp.max(wei, axis=-1, keepdims=True)
    e = jnp.exp(wei - m)
    l = jnp.sum(e, axis=-1, keepdims=True)
    inv = pl.reciprocal(l, approx=True)
    inv = inv * (2.0 - l * inv)
    p = (e * inv).astype(jnp.bfloat16)

    # Weighted sum of values; bf16 MXU feed, f32 accumulation.
    out = jnp.einsum("bts,bsh->bth", p, v, preferred_element_type=jnp.float32)
    o_ref[...] = out.astype(o_ref.dtype)


def fuse_head_weights(wk, wq, wv):
    """Build the fused (C, 3H) projection weight ONCE and cache it.

    wk/wq/wv: (C, H), already transposed relative to torch's nn.Linear weight.
    The reference's C**-0.5 score scale is folded into the Q columns here so
    the kernel never touches the (T, T) score matrix with a scale multiply.
    """
    C = wq.shape[0]
    scale = jnp.float32(C) ** -0.5
    w_kqv = jnp.concatenate([wk, wq * scale, wv], axis=1)
    return w_kqv.astype(jnp.bfloat16)


def head_forward(x, w_kqv):
    """x: (B, T, C); w_kqv: fused bf16 (C, 3H) weight from fuse_head_weights.
    Returns (B, T, H) in x.dtype."""
    B, T, C = x.shape
    assert T <= BLOCK_SIZE and C == w_kqv.shape[0]
    H = w_kqv.shape[1] // 3

    return pl.pallas_call(
        head_kernel,
        out_shape=jax.ShapeDtypeStruct((B, T, H), x.dtype),
        # Whole-array VMEM residents, no grid: single invocation, no pipelining.
        in_specs=[
            pl.BlockSpec(memory_space=pltpu.MemorySpace.VMEM),
            pl.BlockSpec(memory_space=pltpu.MemorySpace.VMEM),
        ],
        out_specs=pl.BlockSpec(memory_space=pltpu.MemorySpace.VMEM),
    )(x.astype(jnp.bfloat16), w_kqv)


def reference_forward(x, wk, wq, wv):
    """Pure-JAX f32 reference mirroring the PyTorch module."""
    B, T, C = x.shape
    k = x @ wk
    q = x @ wq
    v = x @ wv
    wei = (q @ jnp.swapaxes(k, -2, -1)) * (C ** -0.5)
    tril = jnp.tril(jnp.ones((T, T), dtype=bool))
    wei = jnp.where(tril, wei, -jnp.inf)
    wei = jax.nn.softmax(wei, axis=-1)
    return wei @ v


if __name__ == "__main__":
    key = jax.random.PRNGKey(0)
    B, T, C = 2, 8, N_EMBD          # T <= block_size (32)
    head_size = 16

    kx, kk, kq, kv = jax.random.split(key, 4)
    x = jax.random.normal(kx, (B, T, C), dtype=jnp.float32)
    # nn.Linear(n_embd, head_size, bias=False): torch weight is (head_size, C),
    # forward does x @ W.T -> store the transposed (C, head_size) form directly.
    bound = 1.0 / jnp.sqrt(jnp.float32(C))
    wk = jax.random.uniform(kk, (C, head_size), jnp.float32, -bound, bound)
    wq = jax.random.uniform(kq, (C, head_size), jnp.float32, -bound, bound)
    wv = jax.random.uniform(kv, (C, head_size), jnp.float32, -bound, bound)

    # Weight fusion happens once (cached parameter), not per forward call.
    w_kqv = fuse_head_weights(wk, wq, wv)

    out = jax.jit(head_forward)(x, w_kqv)
    out = jax.block_until_ready(out)

    ref = reference_forward(x, wk, wq, wv)
    assert out.shape == (B, T, head_size)
    assert out.dtype == x.dtype
    # Tolerance budget: the MXU operands (x, w_kqv, q/k, p/v) are deliberately
    # fed in bf16 per the performance review; all accumulation and the softmax
    # are f32, and the Newton-refined reciprocal is f32-exact, so the observed
    # error is well below 1e-2 at these magnitudes.
    assert jnp.allclose(out, ref.astype(out.dtype), atol=1e-2, rtol=1e-2), \
        "mismatch vs reference"

    print("KERNEL_OK")
</pallas_src>

<mosaic_0001>
module attributes {stable_mosaic.version = 11 : i64} {
  func.func @head_kernel(%arg0: memref<2x8x64xbf16, #tpu.memory_space<vmem>>, %arg1: memref<64x48xbf16, #tpu.memory_space<vmem>>, %arg2: memref<2x8x16xf32, #tpu.memory_space<vmem>>) attributes {dimension_semantics = [], scalar_prefetch = 0 : i64, scratch_operands = 0 : i64, tpu.core_type = #tpu.core_type<tc>} {
    %c0 = arith.constant 0 : index
    %c0_0 = arith.constant 0 : index
    %c0_1 = arith.constant 0 : index
    %0 = vector.load %arg0[%c0, %c0_0, %c0_1] : memref<2x8x64xbf16, #tpu.memory_space<vmem>>, vector<2x8x64xbf16>
    %c0_2 = arith.constant 0 : index
    %c0_3 = arith.constant 0 : index
    %1 = vector.load %arg1[%c0_2, %c0_3] : memref<64x48xbf16, #tpu.memory_space<vmem>>, vector<64x48xbf16>
    "tpu.trace_start"() <{level = 10 : i32, message = "btc,ch->bth"}> : () -> ()
    %cst = arith.constant dense<0.000000e+00> : vector<2x8x48xf32>
    %2 = tpu.matmul %0, %1, %cst {dimension_numbers = #tpu.dot_dimension_numbers<[2], [0], [0, 1], [1], [0, 0, 0, 1, 1, 1], [], []>} : vector<2x8x64xbf16>, vector<64x48xbf16>, vector<2x8x48xf32> -> vector<2x8x48xf32>
    "tpu.trace_stop"() : () -> ()
    %3 = vector.extract_strided_slice %2 {offsets = [0, 0, 0], sizes = [2, 8, 16], strides = [1, 1, 1]} : vector<2x8x48xf32> to vector<2x8x16xf32>
    %4 = arith.truncf %3 : vector<2x8x16xf32> to vector<2x8x16xbf16>
    %5 = vector.extract_strided_slice %2 {offsets = [0, 0, 16], sizes = [2, 8, 16], strides = [1, 1, 1]} : vector<2x8x48xf32> to vector<2x8x16xf32>
    %6 = arith.truncf %5 : vector<2x8x16xf32> to vector<2x8x16xbf16>
    %7 = vector.extract_strided_slice %2 {offsets = [0, 0, 32], sizes = [2, 8, 16], strides = [1, 1, 1]} : vector<2x8x48xf32> to vector<2x8x16xf32>
    %8 = arith.truncf %7 : vector<2x8x16xf32> to vector<2x8x16xbf16>
    "tpu.trace_start"() <{level = 10 : i32, message = "bth,bsh->bts"}> : () -> ()
    %cst_4 = arith.constant dense<0.000000e+00> : vector<2x8x8xf32>
    %9 = tpu.matmul %6, %4, %cst_4 {dimension_numbers = #tpu.dot_dimension_numbers<[2], [2], [1], [1], [0, 0, 0, 1, 1, 1], [0], [0]>} : vector<2x8x16xbf16>, vector<2x8x16xbf16>, vector<2x8x8xf32> -> vector<2x8x8xf32>
    "tpu.trace_stop"() : () -> ()
    %10 = tpu.iota {dimensions = array<i32: 1>} : vector<2x8x8xi32>
    %11 = tpu.iota {dimensions = array<i32: 2>} : vector<2x8x8xi32>
    %12 = arith.cmpi sle, %11, %10 : vector<2x8x8xi32>
    %cst_5 = arith.constant -1.000000e+30 : f32
    %13 = vector.broadcast %cst_5 : f32 to vector<2x8x8xf32>
    %14 = arith.select %12, %9, %13 : vector<2x8x8xi1>, vector<2x8x8xf32>
    %cst_6 = arith.constant dense<0xFF800000> : vector<2x8xf32>
    %15 = vector.multi_reduction <maximumf>, %14, %cst_6 [2] : vector<2x8x8xf32> to vector<2x8xf32>
    %16 = vector.shape_cast %15 : vector<2x8xf32> to vector<2x8x1xf32>
    %17 = vector.broadcast %16 : vector<2x8x1xf32> to vector<2x8x8xf32>
    %18 = arith.subf %14, %17 : vector<2x8x8xf32>
    %19 = math.exp %18 : vector<2x8x8xf32>
    %cst_7 = arith.constant dense<0.000000e+00> : vector<2x8xf32>
    %20 = vector.multi_reduction <add>, %19, %cst_7 [2] : vector<2x8x8xf32> to vector<2x8xf32>
    %21 = vector.shape_cast %20 : vector<2x8xf32> to vector<2x8x1xf32>
    %22 = tpu.reciprocal %21 {approx = true} : vector<2x8x1xf32> -> vector<2x8x1xf32>
    %23 = arith.mulf %21, %22 : vector<2x8x1xf32>
    %cst_8 = arith.constant 2.000000e+00 : f32
    %24 = vector.broadcast %cst_8 : f32 to vector<2x8x1xf32>
    %25 = arith.subf %24, %23 : vector<2x8x1xf32>
    %26 = arith.mulf %22, %25 : vector<2x8x1xf32>
    %27 = vector.broadcast %26 : vector<2x8x1xf32> to vector<2x8x8xf32>
    %28 = arith.mulf %19, %27 : vector<2x8x8xf32>
    %29 = arith.truncf %28 : vector<2x8x8xf32> to vector<2x8x8xbf16>
    "tpu.trace_start"() <{level = 10 : i32, message = "bts,bsh->bth"}> : () -> ()
    %cst_9 = arith.constant dense<0.000000e+00> : vector<2x8x16xf32>
    %30 = tpu.matmul %29, %8, %cst_9 {dimension_numbers = #tpu.dot_dimension_numbers<[2], [1], [1], [2], [0, 0, 0, 1, 1, 2], [0], [0]>} : vector<2x8x8xbf16>, vector<2x8x16xbf16>, vector<2x8x16xf32> -> vector<2x8x16xf32>
    "tpu.trace_stop"() : () -> ()
    %c0_10 = arith.constant 0 : index
    %c0_11 = arith.constant 0 : index
    %c0_12 = arith.constant 0 : index
    %31 = vector.load %arg2[%c0_10, %c0_11, %c0_12] : memref<2x8x16xf32, #tpu.memory_space<vmem>>, vector<2x8x16xf32>
    tpu.vector_store %arg2[%c0_10, %c0_11, %c0_12], %30 {strides = array<i32>} : memref<2x8x16xf32, #tpu.memory_space<vmem>>, vector<2x8x16xf32>,
    return
  }
}

</mosaic_0001>

<bundles_post_ra>
// kernel: head_forward.1
= control target key start
LH: loop header
LB: loop body
LE: loop exit
PB: predicated region body
PF: predicated region fallthrough
CT: control target
= control target key end

     0   :  { %v454_v1 = vmov 0.0   ;;  %vm455_vm0 = vmmov 0   ;;  %s522_s0 = inlined_call_operand.vmem [shape: bf16[2,8,64], index: 0, kind: input, shape index: {}]   ;;  %s523_s1 = inlined_call_operand.vmem [shape: bf16[64,48], index: 1, kind: input, shape index: {}]   ;;  %s524_s2 = inlined_call_operand.hbm [shape: f32[2,8,16], index: 2, kind: output, shape index: {}]  }
   0x1   :  { %v417_v0 = vld [vmem:[%s523_s1] sm:$0xff]   ;;  %374 = vmatprep.subr.bf16.mxu0 %v454_v1  ;;  %386 = vmatprep.subr.bf16.mxu1 %v454_v1  ;;  %v418_v2 = vld [vmem:[%s523_s1 + $0x8] sm:$0xff]  }
   0x2   :  { %375 = vmatpush3.bf16.msra.mxu0 %v417_v0  ;;  %382 = vmatprep.mubr.msk.bf16.mxu0 %vm455_vm0, %v454_v1 }
   0x3   :  { %376 = vmatprep.subr.bf16.mxu0 %v454_v1  ;;  %388 = vmatprep.mubr.msk.bf16.mxu1 %vm455_vm0, %v454_v1 }
   0x4   :  { %7 = vsyncpa [#allocation3], 0  ;;  %v419_v3 = vld [vmem:[%s523_s1 + $0x10] sm:$0xff]   ;;  %v420_v4 = vld [vmem:[%s523_s1 + $0x18] sm:$0xff]   ;;  %vm52_vm1 = vcmask 523264   ;;  %vm102_vm2 = vcmask 130048   ;;  %v198_v16 = vlaneseq }
   0x5   :  { %v421_v5 = vld [vmem:[%s522_s0] sm:$0xff]   ;;  %s456_s19 = smov 112   ;;  %vm205_vm4 = vcmask 64512   ;;  %s457_s0 = smov 96   ;;  %vm241_vm5 = vcmask 1043456  }
   0x6   :  { %377 = vmatpush3.bf16.msra.mxu0 %v418_v2  ;;  %v199_v17 = vshrl.u32 %v198_v16, 7  ;;  %v201_v18 = vand.u32 127, %v198_v16  ;;  %s458_s1 = smov [#allocation2]  }
   0x7   :  { %378 = vmatprep.subr.bf16.mxu0 %v454_v1  ;;  %s340_s20 = sshll.u32 %s458_s1, 4  ;;  %s341_s20 = int_to_ptr.vmem [resolvable:$true] %s340_s20 }
   0x8   :  { %vm202_vm3 = vcmp.le.s32.totalorder %v201_v18, %v199_v17  ;;  %s430_s21 = scalar_lea.vmem %s341_s20, 256  ;;  %p435_p1 = scmp.lt.s32.totalorder %s341_s20, %s341_s20 }
   0x9   :  { %p431_p0 = scmp.ne.s32.totalorder %s341_s20, %s430_s21  ;;  %p436_p2 = scmp.lt.s32.totalorder %s430_s21, %s430_s21 }
   0xa   :  { %379 = vmatpush3.bf16.msra.mxu0 %v419_v3 }
   0xb   :  { %380 = vmatprep.subr.bf16.mxu0 %v454_v1  ;;  %p437_p3 = por %p436_p2, %p435_p1 }
   0xd   :  { %p438_p4 = pnand %p437_p3, %p431_p0 }
   0xe   :  { %381 = vmatpush3.bf16.msra.mxu0 %v420_v4 }
   0xf   :  { %398 = vmatprep.subr.bf16.mxu0 %v454_v1 }
  0x11   :  { %383 = vmatmul.mubr.msk.bf16.vlgmr.msra.gmra.mrb[0].mxu0 %vm52_vm1, %v421_v5 }
  0x12   :  { %400 = vmatprep.mubr.msk.bf16.mxu0 %vm455_vm0, %v454_v1 }
  0xe4   :  { %v90_v6 = vpop.f32.mrb[0].mxu0 }
  0xe5   :  { %v97_v7 = vpack.c.bf16 %v90_v6, %v90_v6  ;;  %v384_v8 = vpop.f32.mrb[1].mxu0 }
  0xe6   :  { %v93_v9 = vpop.f32.mrb[2].mxu0 }
  0xe7   :  { %100 = vrot.lane.b32.xlu0 %v97_v7, %s456_s19  ;;  %v385_v10 = vpop.f32.mrb[3].mxu0  ;;  %v107_v11 = vsel %vm102_vm2, %v97_v7, 0  ;;  %v98_v12 = vpack.c.bf16 %v93_v9, %v93_v9 }
  0xe8   :  { %387 = vmatpush3.bf16.xpose.msra.mxu1 %v107_v11 }
  0xe9   :  { %392 = vmatprep.subr.bf16.mxu1 %v454_v1  ;;  %v156_v14 = vsel %vm102_vm2, %v98_v12, 0 }
  0xeb   :  { %150 = vrot.lane.b32.xlu0 %v98_v12, %s456_s19 }
 0x159   :  { %v101_v13 = vpop.permute.xlu0 %100 }
 0x15a   :  { %389 = vmatmul.mubr.msk.bf16.vlgmr.msra.gmra.mrb[0].mxu1 %vm102_vm2, %v101_v13 }
 0x15b   :  { %393 = vmatpush3.bf16.xpose.msra.mxu1 %v156_v14  ;;  %394 = vmatprep.mubr.msk.bf16.mxu1 %vm455_vm0, %v454_v1 }
 0x15c   :  { %404 = vmatprep.subr.bf16.mxu1 %v454_v1 }
 0x15d   :  { %v151_v15 = vpop.permute.xlu0 %150 }
 0x162   :  { %395 = vmatmul.mubr.msk.bf16.vlgmr.msra.gmra.mrb[4].mxu1 %vm102_vm2, %v151_v15 }
 0x163   :  { %406 = vmatprep.mubr.msk.bf16.mxu1 %vm455_vm0, %v454_v1 }
 0x22d   :  { %v143_v19 = vpop.f32.mrb[0].mxu1 }
 0x22e   :  { %v203_v20 = vsel %vm202_vm3, %v143_v19, -1e+30  ;;  %v390_v21 = vpop.f32.mrb[1].mxu1 }
 0x22f   :  { %v146_v22 = vpop.f32.mrb[2].mxu1  ;;  %v206_v23 = vsel %vm205_vm4, %v203_v20, -inf }
 0x230   :  { %207 = vmax.xlane.f32.xlu1 %v206_v23  ;;  %v391_v24 = vpop.f32.mrb[3].mxu1 }
 0x235   :  { %v192_v25 = vpop.f32.mrb[4].mxu1 }
 0x236   :  { %v204_v26 = vsel %vm202_vm3, %v192_v25, -1e+30  ;;  %v396_v27 = vpop.f32.mrb[5].mxu1 }
 0x237   :  { %v195_v28 = vpop.f32.mrb[6].mxu1  ;;  %v209_v29 = vsel %vm205_vm4, %v204_v26, -inf }
 0x238   :  { %210 = vmax.xlane.f32.xlu1 %v209_v29  ;;  %v397_v30 = vpop.f32.mrb[7].mxu1 }
 0x249   :  { %236 = vrot.lane.b32.xlu1 %v97_v7, %s457_s0 }
 0x2bd   :  { %v208_v31 = vpop.xlane.xlu1 %207 }
 0x2be   :  { %v212_v32 = vsub.f32 %v203_v20, %v208_v31 }
 0x2c0   :  { %v214_v33 = vmul.f32 1.442695, %v212_v32 }
 0x2c2   :  { %422 = vpow2.f32 %v214_v33 }
 0x2c5   :  { %v211_v34 = vpop.xlane.xlu1 %210 }
 0x2c6   :  { %v213_v35 = vsub.f32 %v204_v26, %v211_v34 }
 0x2c8   :  { %v216_v36 = vmul.f32 1.442695, %v213_v35 }
 0x2c9   :  { %v237_v37 = vpop.permute.xlu1 %236 }
 0x2ca   :  { %424 = vpow2.f32 %v216_v36  ;;  %v243_v38 = vsel %vm241_vm5, %v237_v37, 0 }
 0x2cb   :  { %399 = vmatpush3.bf16.msra.mxu0 %v243_v38 }
 0x2cc   :  { %v423_v39 = vpop.eup %422 }
 0x2cd   :  { %v218_v40 = vsel %vm205_vm4, %v423_v39, 0.0 }
 0x2ce   :  { %219 = vadd.xlane.f32.xlu0 %v218_v40 }
 0x2d4   :  { %v425_v41 = vpop.eup %424 }
 0x2d5   :  { %v221_v42 = vsel %vm205_vm4, %v425_v41, 0.0 }
 0x2d6   :  { %222 = vadd.xlane.f32.xlu1 %v221_v42 }
 0x2e7   :  { %285 = vrot.lane.b32.xlu1 %v98_v12, %s457_s0 }
 0x35b   :  { %v220_v43 = vpop.xlane.xlu0 %219 }
 0x35c   :  { %426 = vrcp.f32 %v220_v43 }
 0x363   :  { %v223_v44 = vpop.xlane.xlu1 %222 }
 0x364   :  { %428 = vrcp.f32 %v223_v44 }
 0x366   :  { %v427_v45 = vpop.eup %426 }
 0x367   :  { %v226_v46 = vmul.f32 %v427_v45, %v220_v43  ;;  %v286_v47 = vpop.permute.xlu1 %285 }
 0x368   :  { %v291_v48 = vsel %vm241_vm5, %v286_v47, 0 }
 0x369   :  { %v228_v49 = vsub.f32 2.0, %v226_v46  ;;  %405 = vmatpush3.bf16.msra.mxu1 %v291_v48 }
 0x36b   :  { %v230_v50 = vmul.f32 %v427_v45, %v228_v49 }
 0x36d   :  { %v232_v51 = vmul.f32 %v423_v39, %v230_v50 }
 0x36e   :  { %v429_v52 = vpop.eup %428 }
 0x36f   :  { %v234_v53 = vpack.c.bf16 %v232_v51, %v232_v51  ;;  %v227_v54 = vmul.f32 %v429_v52, %v223_v44 }
 0x371   :  { %v229_v55 = vsub.f32 2.0, %v227_v54  ;;  %401 = vmatmul.mubr.msk.bf16.vlgmr.msra.gmra.mrb[4].mxu0 %vm205_vm4, %v234_v53 }
 0x373   :  { %v231_v56 = vmul.f32 %v429_v52, %v229_v55 }
 0x375   :  { %v233_v57 = vmul.f32 %v425_v41, %v231_v56 }
 0x377   :  { %v235_v58 = vpack.c.bf16 %v233_v57, %v233_v57 }
 0x379   :  { %407 = vmatmul.mubr.msk.bf16.vlgmr.msra.gmra.mrb[8].mxu1 %vm205_vm4, %v235_v58 }
 0x444   :  { %v279_v59 = vpop.f32.mrb[4].mxu0 }
 0x445   :  { %333 = vst.msk [vmem:[#allocation2] sm:$0xff] %vm102_vm2, %v279_v59  ;;  %v402_v60 = vpop.f32.mrb[5].mxu0 }
 0x446   :  { %v282_v61 = vpop.f32.mrb[6].mxu0 }
 0x447   :  { %v403_v62 = vpop.f32.mrb[7].mxu0 }
 0x44c   :  { %v327_v63 = vpop.f32.mrb[8].mxu1 }
 0x44d   :  { %334 = vst.msk [vmem:[#allocation2 + $0x8] sm:$0xff] %vm102_vm2, %v327_v63  ;;  %v408_v0 = vpop.f32.mrb[9].mxu1 }
 0x44e   :  { %v330_v1 = vpop.f32.mrb[10].mxu1 }
 0x44f   :  { %441 = shalt.err (!%p438_p4)
}
 0x450   :  { %s442_s24 = scalar_lea.hbm %s524_s2, 256 }
 0x451   :  { %p443_p5 = scmp.ne.s32.totalorder %s524_s2, %s442_s24  ;;  %p446_p6 = scmp.lt.u32.totalorder %s442_s24, %s524_s2 }
 0x453   :  { %p448_p7 = pnand %p446_p6, %p443_p5 }
 0x455   :  { %451 = shalt.err (!%p448_p7)
}
 0x456   :  { %s459_s29 = smov 128   ;;  %s460_s30 = smov 8   ;;  %v409_v2 = vpop.f32.mrb[11].mxu1 }
 0x457   :  { %346 = dma.vmem_to_hbm [thread:$0]  %s341_s20, 256, %s524_s2, [#allocation3], %s459_s29, %s459_s29, %s460_s30  }
 0x458   :  { %452 = dma.done.wait [#allocation3], 256  }
 0x459   :  { %453 = vsyncadd [#allocation3], 4294967040 }
 0x45a   :  { %350 = vsyncpa [#allocation3], 1 }

</bundles_post_ra>
